<compile_context>
chip_gen: v7x
topology: tpu7x:2x2x1
jax: 0.10.0
libtpu: 0.0.40
codegen_flags: <defaults>
</compile_context>

<pallas_src>
import functools

import jax
import jax.numpy as jnp
from jax import lax
from jax.experimental import pallas as pl
from jax.experimental.pallas import tpu as pltpu


# -----------------------------------------------------------------------------
# Fused Pallas kernel: GConv1 + sigmoid + GConv2 + log_softmax
# -----------------------------------------------------------------------------
def _fused_g_mhkg_kernel(u_ref, ut_ref, x_ref, w1_ref, s1_ref, b1_ref,
                         w2_ref, s2_ref, b2_ref, o_ref, z2_ref,
                         *, num_valid_classes, tm):
    i = pl.program_id(0)

    # Phase 0 (once): everything up to the spectral-domain layer-2 activations.
    @pl.when(i == 0)
    def _():
        # ---- layer 1:  h = sigmoid(U @ (s1 * (U^T @ (x @ W1))) + b1) ----
        xw = jnp.dot(x_ref[...], w1_ref[...],
                     preferred_element_type=jnp.float32)
        utx = jnp.dot(ut_ref[...], xw, preferred_element_type=jnp.float32)
        h = jnp.dot(u_ref[...], s1_ref[...] * utx,
                    preferred_element_type=jnp.float32) + b1_ref[...]
        h = jax.nn.sigmoid(h)
        # TODO(synk): nn.Dropout(0.3) is identity in eval mode; training-mode
        # stochastic dropout is not reproduced here.

        # ---- layer 2, spectral half:  z2 = s2 * (U^T @ (h @ W2)) ----
        hw = jnp.dot(h.astype(w2_ref.dtype), w2_ref[...],
                     preferred_element_type=jnp.float32)
        z2_ref[...] = s2_ref[...] * jnp.dot(
            ut_ref[...], hw, preferred_element_type=jnp.float32)

    # Per row-tile: logits = U[tile] @ z2 + b2, then stable log_softmax.
    row0 = pl.multiple_of(i * tm, tm)
    u_tile = u_ref[pl.ds(row0, tm), :]
    logits = jnp.dot(u_tile, z2_ref[...],
                     preferred_element_type=jnp.float32) + b2_ref[...]

    # Mask padded class lanes so they don't contaminate the softmax.
    lane = lax.broadcasted_iota(jnp.int32, logits.shape, 1)
    masked = jnp.where(lane < num_valid_classes, logits, jnp.float32(-1e30))
    m = jnp.max(masked, axis=1, keepdims=True)
    z = masked - m
    lse = jnp.log(jnp.sum(jnp.exp(z), axis=1, keepdims=True))
    o_ref[...] = (z - lse).astype(o_ref.dtype)


# -----------------------------------------------------------------------------
# Wrapper
# -----------------------------------------------------------------------------
def _round_up(v, m):
    return (v + m - 1) // m * m


def _full_spec(shape):
    nd = len(shape)
    return pl.BlockSpec(shape, lambda i: (0,) * nd)


def g_mhkg_forward(params, eigen_vectors, lp_eigen, hp_eigen, x,
                   *, compute_dtype=jnp.float32, row_tile=256):
    """Full G_MHKG forward (num_layers=2, eval mode) as one fused Pallas call."""
    n, fin = x.shape
    p1, p2 = params["GConv1"], params["GConv2"]
    hdim = p1["W"].shape[1]
    cdim = p2["W"].shape[1]

    # TPU-friendly padded shapes: lanes -> multiples of 128, rows -> tile/8.
    n_pad = _round_up(n, 8)
    if n_pad > row_tile:
        n_pad = _round_up(n, row_tile)
        tm = row_tile
    else:
        tm = n_pad
    fin_p = _round_up(fin, 128)
    h_p = _round_up(hdim, 128)
    c_p = _round_up(cdim, 128)

    def pad2(a, rows, cols, dtype=None):
        a = a.astype(a.dtype if dtype is None else dtype)
        return jnp.pad(a, ((0, rows - a.shape[0]), (0, cols - a.shape[1])))

    u_p = pad2(eigen_vectors, n_pad, n_pad, compute_dtype)
    ut_p = pad2(eigen_vectors.T, n_pad, n_pad, compute_dtype)  # pre-transposed
    x_p = pad2(x, n_pad, fin_p, compute_dtype)
    w1_p = pad2(p1["W"], fin_p, h_p, compute_dtype)
    w2_p = pad2(p2["W"], h_p, c_p, compute_dtype)

    # Diagonal lp/hp folded with the learned filters into one per-node scale.
    lp = lp_eigen.reshape(n, 1).astype(jnp.float32)
    hp = hp_eigen.reshape(n, 1).astype(jnp.float32)
    s1 = pad2(p1["filter_1"] * lp + p1["filter_2"] * hp, n_pad, 1, jnp.float32)
    s2 = pad2(p2["filter_1"] * lp + p2["filter_2"] * hp, n_pad, 1, jnp.float32)
    b1 = pad2(p1["bias"].reshape(1, hdim), 1, h_p, jnp.float32)
    b2 = pad2(p2["bias"].reshape(1, cdim), 1, c_p, jnp.float32)

    args = (u_p, ut_p, x_p, w1_p, s1, b1, w2_p, s2, b2)

    flops = 2 * (n_pad * fin_p * h_p + 2 * n_pad * n_pad * h_p
                 + n_pad * h_p * c_p + 2 * n_pad * n_pad * c_p)
    bytes_accessed = (sum(int(a.size) * a.dtype.itemsize for a in args)
                      + n_pad * c_p * 4)
    transcendentals = n_pad * (h_p + 2 * c_p)

    out_p = pl.pallas_call(
        functools.partial(_fused_g_mhkg_kernel,
                          num_valid_classes=cdim, tm=tm),
        out_shape=jax.ShapeDtypeStruct((n_pad, c_p), jnp.float32),
        grid=(n_pad // tm,),
        in_specs=[_full_spec(a.shape) for a in args],
        out_specs=pl.BlockSpec((tm, c_p), lambda i: (i, 0)),
        scratch_shapes=[pltpu.VMEM((n_pad, c_p), jnp.float32)],
        compiler_params=pltpu.CompilerParams(
            # Sequential dependence on the z2 scratch written at i == 0.
            dimension_semantics=("arbitrary",)),
        cost_estimate=pl.CostEstimate(
            flops=int(flops),
            transcendentals=int(transcendentals),
            bytes_accessed=int(bytes_accessed)),
    )(*args)

    return out_p[:n, :cdim]


# -----------------------------------------------------------------------------
# Deterministic parameter / graph construction (mirrors the PyTorch __init__
# and initialize_graph, but in plain JAX).
# -----------------------------------------------------------------------------
def xavier_uniform(key, fan_in, fan_out):
    bound = jnp.sqrt(6.0 / (fan_in + fan_out))
    return jax.random.uniform(key, (fan_in, fan_out), jnp.float32,
                              minval=-bound, maxval=bound)


def make_gconv_params(key, in_features, out_features, num_nodes):
    k_w, k_f1, k_f2 = jax.random.split(key, 3)
    return {
        "W": xavier_uniform(k_w, in_features, out_features),
        "filter_1": jax.random.uniform(k_f1, (num_nodes, 1), jnp.float32,
                                       minval=0.9, maxval=1.1),
        "filter_2": jax.random.uniform(k_f2, (num_nodes, 1), jnp.float32,
                                       minval=0.6, maxval=0.8),
        "bias": jnp.zeros((out_features,), jnp.float32),
    }


def build_graph(num_nodes, initial_dyn_coefficient=1.1):
    # Ring graph adjacency (undirected), sym-normalized Laplacian.
    idx = jnp.arange(num_nodes)
    adj = jnp.zeros((num_nodes, num_nodes), jnp.float32)
    adj = adj.at[idx, (idx + 1) % num_nodes].set(1.0)
    adj = adj.at[(idx + 1) % num_nodes, idx].set(1.0)
    deg = jnp.sum(adj, axis=1)
    d_inv_sqrt = 1.0 / jnp.sqrt(deg)
    lap = jnp.eye(num_nodes, dtype=jnp.float32) - (d_inv_sqrt[:, None] * adj *
                                                   d_inv_sqrt[None, :])
    eigenvalues, eigenvectors = jnp.linalg.eigh(lap)
    eigenvalues = jnp.clip(eigenvalues, 0.0, 2.0)

    lp_eigen = jnp.exp(initial_dyn_coefficient * -eigenvalues + 1.0)
    lp_eigen = 2.0 * (lp_eigen - lp_eigen.min()) / (lp_eigen.max() - lp_eigen.min())
    hp_eigen = jnp.exp(eigenvalues - 1.0)
    hp_eigen = 2.0 * (hp_eigen - hp_eigen.min()) / (hp_eigen.max() - hp_eigen.min())

    # Returned as the diagonal vectors (lp = diag(lp_eigen), hp = diag(hp_eigen)).
    return (eigenvectors.astype(jnp.float32),
            lp_eigen.astype(jnp.float32),
            hp_eigen.astype(jnp.float32))


# -----------------------------------------------------------------------------
# Pure-JAX reference (semantics copied 1:1 from the PyTorch module, eval mode),
# using the dense diagonal lp / hp exactly as the original forward does.
# -----------------------------------------------------------------------------
def _gconv_ref(p, u, lp, hp, x):
    xw = x @ p["W"]
    x1 = lp @ u.T @ xw
    x1 = x1 * p["filter_1"]
    x1 = u @ x1
    x2 = hp @ u.T @ xw
    x2 = x2 * p["filter_2"]
    x2 = u @ x2
    return x1 + x2 + p["bias"]


def g_mhkg_ref(params, u, lp_eigen, hp_eigen, x):
    lp = jnp.diag(lp_eigen)
    hp = jnp.diag(hp_eigen)
    h = jax.nn.sigmoid(_gconv_ref(params["GConv1"], u, lp, hp, x))
    out = _gconv_ref(params["GConv2"], u, lp, hp, h)
    return jax.nn.log_softmax(out, axis=1)


# -----------------------------------------------------------------------------
if __name__ == "__main__":
    num_nodes = 16
    num_features = 8
    nhid = 32
    num_classes = 4

    key = jax.random.PRNGKey(0)
    k_x, k_l1, k_l2 = jax.random.split(key, 3)

    x = jax.random.normal(k_x, (num_nodes, num_features), jnp.float32)
    params = {
        "GConv1": make_gconv_params(k_l1, num_features, nhid, num_nodes),
        "GConv2": make_gconv_params(k_l2, nhid, num_classes, num_nodes),
    }
    eigen_vectors, lp_eigen, hp_eigen = build_graph(num_nodes)

    out = g_mhkg_forward(params, eigen_vectors, lp_eigen, hp_eigen, x)
    out = jax.block_until_ready(out)

    ref = g_mhkg_ref(params, eigen_vectors, lp_eigen, hp_eigen, x)
    assert out.shape == (num_nodes, num_classes)
    assert jnp.allclose(out, ref, atol=1e-4, rtol=1e-4), (
        f"max abs err {jnp.max(jnp.abs(out - ref))}")

    print("KERNEL_OK")
</pallas_src>

<mosaic_0001>
module attributes {stable_mosaic.version = 11 : i64} {
  func.func @_fused_g_mhkg_kernel(%arg0: i32, %arg1: memref<16x16xf32, #tpu.memory_space<vmem>>, %arg2: memref<16x16xf32, #tpu.memory_space<vmem>>, %arg3: memref<16x128xf32, #tpu.memory_space<vmem>>, %arg4: memref<128x128xf32, #tpu.memory_space<vmem>>, %arg5: memref<16x1xf32, #tpu.memory_space<vmem>>, %arg6: memref<1x128xf32, #tpu.memory_space<vmem>>, %arg7: memref<128x128xf32, #tpu.memory_space<vmem>>, %arg8: memref<16x1xf32, #tpu.memory_space<vmem>>, %arg9: memref<1x128xf32, #tpu.memory_space<vmem>>, %arg10: memref<16x128xf32, #tpu.memory_space<vmem>>, %arg11: memref<16x128xf32, #tpu.memory_space<vmem>>) attributes {dimension_semantics = [#tpu.dimension_semantics<arbitrary>], iteration_bounds = array<i64: 1>, scalar_prefetch = 0 : i64, scratch_operands = 1 : i64, tpu.core_type = #tpu.core_type<tc>, window_params = [{pipeline_mode = #tpu.pipeline_mode<synchronous>, transform_indices = @transform_0, window_bounds = array<i64: 16, 16>}, {pipeline_mode = #tpu.pipeline_mode<synchronous>, transform_indices = @transform_1, window_bounds = array<i64: 16, 16>}, {pipeline_mode = #tpu.pipeline_mode<synchronous>, transform_indices = @transform_2, window_bounds = array<i64: 16, 128>}, {pipeline_mode = #tpu.pipeline_mode<synchronous>, transform_indices = @transform_3, window_bounds = array<i64: 128, 128>}, {pipeline_mode = #tpu.pipeline_mode<synchronous>, transform_indices = @transform_4, window_bounds = array<i64: 16, 1>}, {pipeline_mode = #tpu.pipeline_mode<synchronous>, transform_indices = @transform_5, window_bounds = array<i64: 1, 128>}, {pipeline_mode = #tpu.pipeline_mode<synchronous>, transform_indices = @transform_6, window_bounds = array<i64: 128, 128>}, {pipeline_mode = #tpu.pipeline_mode<synchronous>, transform_indices = @transform_7, window_bounds = array<i64: 16, 1>}, {pipeline_mode = #tpu.pipeline_mode<synchronous>, transform_indices = @transform_8, window_bounds = array<i64: 1, 128>}, {transform_indices = @transform_9, window_bounds = array<i64: 16, 128>}]} {
    %c0_i32 = arith.constant 0 : i32
    %0 = arith.cmpi eq, %arg0, %c0_i32 : i32
    %1 = arith.extui %0 : i1 to i32
    %c0_i32_0 = arith.constant 0 : i32
    %2 = arith.cmpi ne, %1, %c0_i32_0 : i32
    scf.if %2 {
      %c0_10 = arith.constant 0 : index
      %c0_11 = arith.constant 0 : index
      %28 = vector.load %arg3[%c0_10, %c0_11] : memref<16x128xf32, #tpu.memory_space<vmem>>, vector<16x128xf32>
      %c0_12 = arith.constant 0 : index
      %c0_13 = arith.constant 0 : index
      %29 = vector.load %arg4[%c0_12, %c0_13] : memref<128x128xf32, #tpu.memory_space<vmem>>, vector<128x128xf32>
      %cst_14 = arith.constant dense<0.000000e+00> : vector<16x128xf32>
      %30 = tpu.matmul %28, %29, %cst_14 {dimension_numbers = #tpu.dot_dimension_numbers<[1], [0], [0], [1], [0, 0, 1, 1], [], []>} : vector<16x128xf32>, vector<128x128xf32>, vector<16x128xf32> -> vector<16x128xf32>
      %c0_15 = arith.constant 0 : index
      %c0_16 = arith.constant 0 : index
      %31 = vector.load %arg2[%c0_15, %c0_16] : memref<16x16xf32, #tpu.memory_space<vmem>>, vector<16x16xf32>
      %cst_17 = arith.constant dense<0.000000e+00> : vector<16x128xf32>
      %32 = tpu.matmul %31, %30, %cst_17 {dimension_numbers = #tpu.dot_dimension_numbers<[1], [0], [0], [1], [0, 0, 1, 1], [], []>} : vector<16x16xf32>, vector<16x128xf32>, vector<16x128xf32> -> vector<16x128xf32>
      %c0_18 = arith.constant 0 : index
      %c0_19 = arith.constant 0 : index
      %33 = vector.load %arg1[%c0_18, %c0_19] : memref<16x16xf32, #tpu.memory_space<vmem>>, vector<16x16xf32>
      %c0_20 = arith.constant 0 : index
      %c0_21 = arith.constant 0 : index
      %34 = vector.load %arg5[%c0_20, %c0_21] : memref<16x1xf32, #tpu.memory_space<vmem>>, vector<16x1xf32>
      %35 = vector.broadcast %34 : vector<16x1xf32> to vector<16x128xf32>
      %36 = arith.mulf %35, %32 : vector<16x128xf32>
      %cst_22 = arith.constant dense<0.000000e+00> : vector<16x128xf32>
      %37 = tpu.matmul %33, %36, %cst_22 {dimension_numbers = #tpu.dot_dimension_numbers<[1], [0], [0], [1], [0, 0, 1, 1], [], []>} : vector<16x16xf32>, vector<16x128xf32>, vector<16x128xf32> -> vector<16x128xf32>
      %c0_23 = arith.constant 0 : index
      %c0_24 = arith.constant 0 : index
      %38 = vector.load %arg6[%c0_23, %c0_24] : memref<1x128xf32, #tpu.memory_space<vmem>>, vector<1x128xf32>
      %39 = vector.broadcast %38 : vector<1x128xf32> to vector<16x128xf32>
      %40 = arith.addf %37, %39 : vector<16x128xf32>
      %41 = arith.negf %40 : vector<16x128xf32>
      %42 = math.exp %41 : vector<16x128xf32>
      %cst_25 = arith.constant 1.000000e+00 : f32
      %43 = vector.broadcast %cst_25 : f32 to vector<16x128xf32>
      %44 = arith.addf %43, %42 : vector<16x128xf32>
      %45 = arith.divf %43, %44 : vector<16x128xf32>
      %c0_26 = arith.constant 0 : index
      %c0_27 = arith.constant 0 : index
      %46 = vector.load %arg7[%c0_26, %c0_27] : memref<128x128xf32, #tpu.memory_space<vmem>>, vector<128x128xf32>
      %cst_28 = arith.constant dense<0.000000e+00> : vector<16x128xf32>
      %47 = tpu.matmul %45, %46, %cst_28 {dimension_numbers = #tpu.dot_dimension_numbers<[1], [0], [0], [1], [0, 0, 1, 1], [], []>} : vector<16x128xf32>, vector<128x128xf32>, vector<16x128xf32> -> vector<16x128xf32>
      %c0_29 = arith.constant 0 : index
      %c0_30 = arith.constant 0 : index
      %48 = vector.load %arg8[%c0_29, %c0_30] : memref<16x1xf32, #tpu.memory_space<vmem>>, vector<16x1xf32>
      %c0_31 = arith.constant 0 : index
      %c0_32 = arith.constant 0 : index
      %49 = vector.load %arg2[%c0_31, %c0_32] : memref<16x16xf32, #tpu.memory_space<vmem>>, vector<16x16xf32>
      %cst_33 = arith.constant dense<0.000000e+00> : vector<16x128xf32>
      %50 = tpu.matmul %49, %47, %cst_33 {dimension_numbers = #tpu.dot_dimension_numbers<[1], [0], [0], [1], [0, 0, 1, 1], [], []>} : vector<16x16xf32>, vector<16x128xf32>, vector<16x128xf32> -> vector<16x128xf32>
      %51 = vector.broadcast %48 : vector<16x1xf32> to vector<16x128xf32>
      %52 = arith.mulf %51, %50 : vector<16x128xf32>
      %c0_34 = arith.constant 0 : index
      %c0_35 = arith.constant 0 : index
      %53 = vector.load %arg11[%c0_34, %c0_35] : memref<16x128xf32, #tpu.memory_space<vmem>>, vector<16x128xf32>
      tpu.vector_store %arg11[%c0_34, %c0_35], %52 {strides = array<i32>} : memref<16x128xf32, #tpu.memory_space<vmem>>, vector<16x128xf32>,
    } else {
    }
    %c16_i32 = arith.constant 16 : i32
    %3 = arith.muli %arg0, %c16_i32 : i32
    %4 = tpu.assume_multiple %3, 16 : i32
    %5 = arith.index_cast %4 : i32 to index
    %c0 = arith.constant 0 : index
    %6 = vector.load %arg1[%5, %c0] : memref<16x16xf32, #tpu.memory_space<vmem>>, vector<16x16xf32>
    %c0_1 = arith.constant 0 : index
    %c0_2 = arith.constant 0 : index
    %7 = vector.load %arg11[%c0_1, %c0_2] : memref<16x128xf32, #tpu.memory_space<vmem>>, vector<16x128xf32>
    %cst = arith.constant dense<0.000000e+00> : vector<16x128xf32>
    %8 = tpu.matmul %6, %7, %cst {dimension_numbers = #tpu.dot_dimension_numbers<[1], [0], [0], [1], [0, 0, 1, 1], [], []>} : vector<16x16xf32>, vector<16x128xf32>, vector<16x128xf32> -> vector<16x128xf32>
    %c0_3 = arith.constant 0 : index
    %c0_4 = arith.constant 0 : index
    %9 = vector.load %arg9[%c0_3, %c0_4] : memref<1x128xf32, #tpu.memory_space<vmem>>, vector<1x128xf32>
    %10 = vector.broadcast %9 : vector<1x128xf32> to vector<16x128xf32>
    %11 = arith.addf %8, %10 : vector<16x128xf32>
    %12 = tpu.iota {dimensions = array<i32: 1>} : vector<16x128xi32>
    %c4_i32 = arith.constant 4 : i32
    %13 = vector.broadcast %c4_i32 : i32 to vector<16x128xi32>
    %14 = arith.cmpi slt, %12, %13 : vector<16x128xi32>
    %cst_5 = arith.constant -1.000000e+30 : f32
    %15 = vector.broadcast %cst_5 : f32 to vector<16x128xf32>
    %16 = arith.select %14, %11, %15 : vector<16x128xi1>, vector<16x128xf32>
    %cst_6 = arith.constant dense<0xFF800000> : vector<16xf32>
    %17 = vector.multi_reduction <maximumf>, %16, %cst_6 [1] : vector<16x128xf32> to vector<16xf32>
    %18 = vector.shape_cast %17 : vector<16xf32> to vector<16x1xf32>
    %19 = vector.broadcast %18 : vector<16x1xf32> to vector<16x128xf32>
    %20 = arith.subf %16, %19 : vector<16x128xf32>
    %21 = math.exp %20 : vector<16x128xf32>
    %cst_7 = arith.constant dense<0.000000e+00> : vector<16xf32>
    %22 = vector.multi_reduction <add>, %21, %cst_7 [1] : vector<16x128xf32> to vector<16xf32>
    %23 = vector.shape_cast %22 : vector<16xf32> to vector<16x1xf32>
    %24 = math.log %23 : vector<16x1xf32>
    %25 = vector.broadcast %24 : vector<16x1xf32> to vector<16x128xf32>
    %26 = arith.subf %20, %25 : vector<16x128xf32>
    %c0_8 = arith.constant 0 : index
    %c0_9 = arith.constant 0 : index
    %27 = vector.load %arg10[%c0_8, %c0_9] : memref<16x128xf32, #tpu.memory_space<vmem>>, vector<16x128xf32>
    tpu.vector_store %arg10[%c0_8, %c0_9], %26 {strides = array<i32>} : memref<16x128xf32, #tpu.memory_space<vmem>>, vector<16x128xf32>,
    return
  }
  func.func @transform_0(%arg0: i32) -> (i32, i32) {
    %c0_i32 = arith.constant 0 : i32
    %c0_i32_0 = arith.constant 0 : i32
    %c0_i32_1 = arith.constant 0 : i32
    return %c0_i32, %c0_i32_0 : i32, i32
  }
  func.func @transform_1(%arg0: i32) -> (i32, i32) {
    %c0_i32 = arith.constant 0 : i32
    %c0_i32_0 = arith.constant 0 : i32
    %c0_i32_1 = arith.constant 0 : i32
    return %c0_i32, %c0_i32_0 : i32, i32
  }
  func.func @transform_2(%arg0: i32) -> (i32, i32) {
    %c0_i32 = arith.constant 0 : i32
    %c0_i32_0 = arith.constant 0 : i32
    %c0_i32_1 = arith.constant 0 : i32
    return %c0_i32, %c0_i32_0 : i32, i32
  }
  func.func @transform_3(%arg0: i32) -> (i32, i32) {
    %c0_i32 = arith.constant 0 : i32
    %c0_i32_0 = arith.constant 0 : i32
    %c0_i32_1 = arith.constant 0 : i32
    return %c0_i32, %c0_i32_0 : i32, i32
  }
  func.func @transform_4(%arg0: i32) -> (i32, i32) {
    %c0_i32 = arith.constant 0 : i32
    %c0_i32_0 = arith.constant 0 : i32
    %c0_i32_1 = arith.constant 0 : i32
    return %c0_i32, %c0_i32_0 : i32, i32
  }
  func.func @transform_5(%arg0: i32) -> (i32, i32) {
    %c0_i32 = arith.constant 0 : i32
    %c0_i32_0 = arith.constant 0 : i32
    %c0_i32_1 = arith.constant 0 : i32
    return %c0_i32, %c0_i32_0 : i32, i32
  }
  func.func @transform_6(%arg0: i32) -> (i32, i32) {
    %c0_i32 = arith.constant 0 : i32
    %c0_i32_0 = arith.constant 0 : i32
    %c0_i32_1 = arith.constant 0 : i32
    return %c0_i32, %c0_i32_0 : i32, i32
  }
  func.func @transform_7(%arg0: i32) -> (i32, i32) {
    %c0_i32 = arith.constant 0 : i32
    %c0_i32_0 = arith.constant 0 : i32
    %c0_i32_1 = arith.constant 0 : i32
    return %c0_i32, %c0_i32_0 : i32, i32
  }
  func.func @transform_8(%arg0: i32) -> (i32, i32) {
    %c0_i32 = arith.constant 0 : i32
    %c0_i32_0 = arith.constant 0 : i32
    %c0_i32_1 = arith.constant 0 : i32
    return %c0_i32, %c0_i32_0 : i32, i32
  }
  func.func @transform_9(%arg0: i32) -> (i32, i32) {
    %c0_i32 = arith.constant 0 : i32
    %c0_i32_0 = arith.constant 0 : i32
    return %arg0, %c0_i32 : i32, i32
  }
}

</mosaic_0001>

<bundles_post_ra>
// kernel: tpu_custom_call.1
= control target key start
LH: loop header
LB: loop body
LE: loop exit
PB: predicated region body
PF: predicated region fallthrough
CT: control target
= control target key end

     0   :  { %14 = vsyncpa [#allocation4], 0  ;;  %s1228_s0 = inlined_call_operand.vmem [shape: f32[16,16], index: 0, kind: input, shape index: {}]   ;;  %s1229_s1 = inlined_call_operand.vmem [shape: f32[16,16], index: 1, kind: input, shape index: {}]   ;;  %s1230_s2 = inlined_call_operand.hbm [shape: f32[16,128], index: 2, kind: input, shape index: {}]   ;;  %s1231_s3 = inlined_call_operand.hbm [shape: f32[128,128], index: 3, kind: input, shape index: {}]   ;;  %s1232_s4 = inlined_call_operand.vmem [shape: f32[16,1], index: 4, kind: input, shape index: {}]   ;;  %s1233_s5 = inlined_call_operand.vmem [shape: f32[1,128], index: 5, kind: input, shape index: {}]   ;;  %s1234_s6 = inlined_call_operand.hbm [shape: f32[128,128], index: 6, kind: input, shape index: {}]   ;;  %s1235_s7 = inlined_call_operand.vmem [shape: f32[16,1], index: 7, kind: input, shape index: {}]   ;;  %s1236_s8 = inlined_call_operand.vmem [shape: f32[1,128], index: 8, kind: input, shape index: {}]   ;;  %s1237_s9 = inlined_call_operand.hbm [shape: f32[16,128], index: 9, kind: output, shape index: {}]  }
   0x1   :  { %15 = vsyncpa [#allocation7], 0 }
   0x2   :  { %16 = vsyncpa [#allocation5], 0  ;;  %s1054_s30 = smov [#allocation6]   ;;  %s1055_s11 = smov [#allocation3]  }
   0x3   :  { %s38_s10 = sshll.u32 %s1054_s30, 4  ;;  %s26_s12 = sshll.u32 %s1055_s11, 4  ;;  %s39_s10 = int_to_ptr.vmem [resolvable:$true] %s38_s10  ;;  %s1111_s12 = int_to_ptr.vmem [resolvable:$true] %s26_s12 }
   0x4   :  { %s960_s15 = scalar_lea.hbm %s1231_s3, 2048 }
   0x5   :  { %p961_p0 = scmp.ne.s32.totalorder %s1231_s3, %s960_s15  ;;  %p964_p1 = scmp.lt.u32.totalorder %s960_s15, %s1231_s3 }
   0x7   :  { %p966_p2 = pnand %p964_p1, %p961_p0 }
   0x9   :  { %969 = shalt.err (!%p966_p2)
}
   0xa   :  { %s970_s20 = scalar_lea.vmem %s39_s10, 2048  ;;  %p975_p4 = scmp.lt.s32.totalorder %s39_s10, %s39_s10 }
   0xb   :  { %p971_p3 = scmp.ne.s32.totalorder %s39_s10, %s970_s20  ;;  %p976_p5 = scmp.lt.s32.totalorder %s970_s20, %s970_s20 }
   0xd   :  { %p977_p6 = por %p976_p5, %p975_p4 }
   0xf   :  { %p978_p7 = pnand %p977_p6, %p971_p3 }
  0x11   :  { %981 = shalt.err (!%p978_p7)
}
  0x12   :  { %s1056_s21 = smov 128   ;;  %s1057_s22 = smov 8  }
  0x13   :  { %44 = dma.hbm_to_vmem [thread:$0]  %s1231_s3, 2048, %s39_s10, [#allocation7], %s1056_s21, %s1056_s21, %s1057_s22  }
  0x14   :  { %s982_s27 = scalar_lea.hbm %s1230_s2, 256 }
  0x15   :  { %p983_p8 = scmp.ne.s32.totalorder %s1230_s2, %s982_s27  ;;  %p986_p9 = scmp.lt.u32.totalorder %s982_s27, %s1230_s2 }
  0x17   :  { %p988_p10 = pnand %p986_p9, %p983_p8 }
  0x19   :  { %991 = shalt.err (!%p988_p10)
}
  0x1a   :  { %s992_s13 = scalar_lea.vmem %s1111_s12, 256  ;;  %p997_p12 = scmp.lt.s32.totalorder %s1111_s12, %s1111_s12 }
  0x1b   :  { %p993_p11 = scmp.ne.s32.totalorder %s1111_s12, %s992_s13  ;;  %p998_p13 = scmp.lt.s32.totalorder %s992_s13, %s992_s13 }
  0x1d   :  { %p999_p0 = por %p998_p13, %p997_p12 }
  0x1f   :  { %p1000_p1 = pnand %p999_p0, %p993_p11 }
  0x21   :  { %1003 = shalt.err (!%p1000_p1)
}
  0x22   :  { %32 = dma.hbm_to_vmem [thread:$0]  %s1230_s2, 256, %s1111_s12, [#allocation4], %s1056_s21, %s1056_s21, %s1057_s22  }
  0x23   :  { %s1058_s14 = smov [#allocation8]   ;;  %s1004_s18 = scalar_lea.hbm %s1234_s6, 2048 }
  0x24   :  { %s54_s15 = sshll.u32 %s1058_s14, 4  ;;  %p1005_p2 = scmp.ne.s32.totalorder %s1234_s6, %s1004_s18  ;;  %s55_s15 = int_to_ptr.vmem [resolvable:$true] %s54_s15 }
  0x25   :  { %p1008_p3 = scmp.lt.u32.totalorder %s1004_s18, %s1234_s6 }
  0x27   :  { %p1010_p4 = pnand %p1008_p3, %p1005_p2 }
  0x29   :  { %1013 = shalt.err (!%p1010_p4)
}
  0x2a   :  { %s1014_s25 = scalar_lea.vmem %s55_s15, 2048  ;;  %p1019_p6 = scmp.lt.s32.totalorder %s55_s15, %s55_s15 }
  0x2b   :  { %p1015_p5 = scmp.ne.s32.totalorder %s55_s15, %s1014_s25  ;;  %p1020_p7 = scmp.lt.s32.totalorder %s1014_s25, %s1014_s25 }
  0x2d   :  { %p1021_p8 = por %p1020_p7, %p1019_p6 }
  0x2f   :  { %p1022_p9 = pnand %p1021_p8, %p1015_p5 }
  0x31   :  { %1025 = shalt.err (!%p1022_p9)
}
  0x32   :  { %60 = dma.hbm_to_vmem [thread:$0]  %s1234_s6, 2048, %s55_s15, [#allocation7], %s1056_s21, %s1056_s21, %s1057_s22  }
  0x33   :  { %1048 = dma.done.wait [#allocation4], 256  }
  0x34   :  { %1049 = vsyncadd [#allocation4], 4294967040 }
  0x35   :  { %1050 = dma.done.wait [#allocation7], 4096  }
  0x36   :  { %1051 = vsyncadd [#allocation7], 4294963200  ;;  %v80_v0 = vld [vmem:[#allocation6] sm:$0xff]  ;;  %v81_v1 = vld [vmem:[#allocation6 + $0x8] sm:$0xff]  ;;  %vm173_vm0 = vcmask 130048   ;;  %v1059_v28 = vmov 0  }
  0x37   :  { %v82_v2 = vld [vmem:[#allocation6 + $0x10] sm:$0xff]  ;;  %v855_v3 = vpack.c.bf16 %v81_v1, %v80_v0  ;;  %v83_v4 = vld [vmem:[#allocation6 + $0x18] sm:$0xff]  ;;  %v84_v6 = vld [vmem:[#allocation6 + $0x20] sm:$0xff]  ;;  %942 = vset.pattern.permute.xlu0 %v1059_v28  ;;  %943 = vset.pattern.permute.xlu1 %v1059_v28  ;;  %v648_v28 = vlaneseq }
  0x38   :  { %v859_v5 = vpack.c.bf16 %v83_v4, %v82_v2  ;;  %v85_v7 = vld [vmem:[#allocation6 + $0x28] sm:$0xff]  ;;  %v78_v9 = vld [vmem:[#allocation3] sm:$0xff]  ;;  %v87_v11 = vld [vmem:[#allocation6 + $0x38] sm:$0xff] }
  0x39   :  { %856 = vmatprep.subr.bf16.mxu0 %v855_v3  ;;  %v863_v8 = vpack.c.bf16 %v85_v7, %v84_v6  ;;  %v86_v10 = vld [vmem:[#allocation6 + $0x30] sm:$0xff]  ;;  %789 = vmatprep.mubr.f32.mxu0 %v78_v9  ;;  %v88_v13 = vld [vmem:[#allocation6 + $0x40] sm:$0xff]  ;;  %v89_v14 = vld [vmem:[#allocation6 + $0x48] sm:$0xff] }
  0x3a   :  { %858 = vmatpush3.bf16.msra.mxu0 %v855_v3  ;;  %v867_v12 = vpack.c.bf16 %v87_v11, %v86_v10  ;;  %v871_v15 = vpack.c.bf16 %v89_v14, %v88_v13  ;;  %v90_v16 = vld [vmem:[#allocation6 + $0x50] sm:$0xff]  ;;  %v91_v17 = vld [vmem:[#allocation6 + $0x58] sm:$0xff]  ;;  %v92_v19 = vld [vmem:[#allocation6 + $0x60] sm:$0xff] }
  0x3b   :  { %860 = vmatprep.subr.bf16.mxu0 %v859_v5  ;;  %v875_v18 = vpack.c.bf16 %v91_v17, %v90_v16  ;;  %v93_v20 = vld [vmem:[#allocation6 + $0x68] sm:$0xff]  ;;  %v94_v22 = vld [vmem:[#allocation6 + $0x70] sm:$0xff]  ;;  %v95_v23 = vld [vmem:[#allocation6 + $0x78] sm:$0xff] }
  0x3c   :  { %v879_v21 = vpack.c.bf16 %v93_v20, %v92_v19  ;;  %v883_v24 = vpack.c.bf16 %v95_v23, %v94_v22  ;;  %v79_v25 = vld [vmem:[#allocation3 + $0x8] sm:$0xff]  ;;  %v171_v26 = vld [vmem:[%s1229_s1] sm:$0xff]  ;;  %v371_v40 = vld [vmem:[#allocation8] sm:$0xff] }
  0x3d   :  { %796 = vmatprep.mubr.msk.f32.mxu1 %vm173_vm0, %v171_v26  ;;  %v257_v27 = vld [vmem:[%s1232_s4] sm:$0xff]  ;;  %v258_v29 = vld [vmem:[%s1232_s4 + $0x8] sm:$0xff]  ;;  %v372_v41 = vld [vmem:[#allocation8 + $0x8] sm:$0xff] }
  0x3e   :  { %862 = vmatpush3.bf16.msra.mxu0 %v859_v5  ;;  %261 = vperm.xlu0 %942, %v257_v27   ;;  %v1177_v33 = vld [vmem:[%s1229_s1 + $0x8] sm:$0xff]  ;;  %v1184_v34 = vld [vmem:[%s1228_s0] sm:$0xff]  ;;  %v895_v44 = vpack.c.bf16 %v372_v41, %v371_v40  ;;  %v375_v49 = vld [vmem:[#allocation8 + $0x20] sm:$0xff] }
  0x3f   :  { %864 = vmatprep.subr.bf16.mxu0 %v863_v8  ;;  %v1191_v45 = vld [vmem:[%s1228_s0 + $0x8] sm:$0xff]  ;;  %v373_v46 = vld [vmem:[#allocation8 + $0x10] sm:$0xff]  ;;  %v376_v50 = vld [vmem:[#allocation8 + $0x28] sm:$0xff] }
  0x40   :  { %v374_v47 = vld [vmem:[#allocation8 + $0x18] sm:$0xff]  ;;  %v903_v51 = vpack.c.bf16 %v376_v50, %v375_v49  ;;  %v377_v52 = vld [vmem:[#allocation8 + $0x30] sm:$0xff]  ;;  %v379_v55 = vld [vmem:[#allocation8 + $0x40] sm:$0xff] }
  0x41   :  { %v899_v48 = vpack.c.bf16 %v374_v47, %v373_v46  ;;  %v378_v53 = vld [vmem:[#allocation8 + $0x38] sm:$0xff]  ;;  %v380_v56 = vld [vmem:[#allocation8 + $0x48] sm:$0xff]  ;;  %v381_v58 = vld [vmem:[#allocation8 + $0x50] sm:$0xff] }
  0x42   :  { %866 = vmatpush3.bf16.msra.mxu0 %v863_v8  ;;  %266 = vperm.xlu0 %942, %v258_v29   ;;  %v907_v54 = vpack.c.bf16 %v378_v53, %v377_v52  ;;  %v911_v57 = vpack.c.bf16 %v380_v56, %v379_v55  ;;  %v382_v59 = vld [vmem:[#allocation8 + $0x58] sm:$0xff]  ;;  %v383_v61 = vld [vmem:[#allocation8 + $0x60] sm:$0xff]  ;;  %v384_v62 = vld [vmem:[#allocation8 + $0x68] sm:$0xff]  ;;  %v649_v29 = vand.u32 127, %v648_v28 }
  0x43   :  { %868 = vmatprep.subr.bf16.mxu0 %v867_v12  ;;  %v915_v60 = vpack.c.bf16 %v382_v59, %v381_v58  ;;  %v385_v63 = vld [vmem:[#allocation8 + $0x70] sm:$0xff]  ;;  %v919_v0 = vpack.c.bf16 %v384_v62, %v383_v61  ;;  %v386_v1 = vld [vmem:[#allocation8 + $0x78] sm:$0xff] }
  0x44   :  { %v923_v2 = vpack.c.bf16 %v386_v1, %v385_v63  ;;  %v695_v3 = vld [vmem:[%s1233_s5] ss:$0 sm:$0xff]  ;;  %v463_v17 = vld [vmem:[%s1235_s7 + $0x8] sm:$0xff]  ;;  %vm650_vm1 = vcmp.lt.s32.totalorder %v649_v29, 4 }
  0x45   :  { %v462_v16 = vld [vmem:[%s1235_s7] sm:$0xff] }
  0x46   :  { %870 = vmatpush3.bf16.msra.mxu0 %v867_v12  ;;  %541 = vperm.xlu1 %943, %v462_v16  }
  0x47   :  { %872 = vmatprep.subr.bf16.mxu0 %v871_v15 }
  0x4a   :  { %874 = vmatpush3.bf16.msra.mxu0 %v871_v15  ;;  %546 = vperm.xlu1 %943, %v463_v17  }
  0x4b   :  { %876 = vmatprep.subr.bf16.mxu0 %v875_v18 }
  0x4e   :  { %878 = vmatpush3.bf16.msra.mxu0 %v875_v18 }
  0x4f   :  { %880 = vmatprep.subr.bf16.mxu0 %v879_v21 }
  0x52   :  { %882 = vmatpush3.bf16.msra.mxu0 %v879_v21 }
  0x53   :  { %884 = vmatprep.subr.bf16.mxu0 %v883_v24 }
  0x56   :  { %886 = vmatpush3.bf16.msra.mxu0 %v883_v24 }
  0x59   :  { %790 = vmatmul.mubr.f32.vlgmr.msra.gmra.mrb[0].mxu0 %v79_v25 }
  0x5a   :  { %845 = vmatprep.mubr.msk.f32.mxu0 %vm173_vm0, %v171_v26 }
  0xbd   :  { %v262_v35 = vpop.permute.xlu0 %261 }
  0xc1   :  { %v267_v36 = vpop.permute.xlu0 %266 }
  0xc5   :  { %v542_v21 = vpop.permute.xlu1 %541 }
  0xc9   :  { %v547_v22 = vpop.permute.xlu1 %546 }
 0x12c   :  { %v791_v30 = vpop.f32.mrb[0].mxu0 }
 0x12d   :  { %v162_v31 = vpop.f32.mrb[1].mxu0 }
 0x12e   :  { %v887_v32 = vpack.c.bf16 %v791_v30, %v162_v31  ;;  %v702_v30 = vld [vmem:[%s1236_s8] ss:$0 sm:$0xff]  ;;  %s1060_s8 = smov [#allocation9]  }
 0x12f   :  { %s680_s19 = sshll.u32 %s1060_s8, 4  ;;  %s681_s19 = int_to_ptr.vmem [resolvable:$true] %s680_s19 }
 0x130   :  { %888 = vmatprep.subr.bf16.mxu1 %v887_v32  ;;  %s1026_s20 = scalar_lea.vmem %s681_s19, 256  ;;  %p1031_p11 = scmp.lt.s32.totalorder %s681_s19, %s681_s19 }
 0x131   :  { %890 = vmatpush3.bf16.msra.mxu1 %v887_v32  ;;  %p1027_p10 = scmp.ne.s32.totalorder %s681_s19, %s1026_s20  ;;  %p1032_p12 = scmp.lt.s32.totalorder %s1026_s20, %s1026_s20 }
 0x133   :  { %p1033_p13 = por %p1032_p12, %p1031_p11 }
 0x134   :  { %797 = vmatmul.mubr.msk.f32.vlgmr.msra.gmra.mrb[0].mxu1 %vm173_vm0, %v1177_v33 }
 0x135   :  { %803 = vmatprep.mubr.msk.f32.mxu1 %vm173_vm0, %v1184_v34  ;;  %p1034_p0 = pnand %p1033_p13, %p1027_p10 }
 0x207   :  { %v798_v37 = vpop.f32.mrb[0].mxu1 }
 0x208   :  { %v270_v38 = vmul.f32 %v798_v37, %v267_v36  ;;  %v246_v39 = vpop.f32.mrb[1].mxu1 }
 0x209   :  { %v269_v42 = vmul.f32 %v262_v35, %v246_v39 }
 0x20b   :  { %v891_v43 = vpack.c.bf16 %v270_v38, %v269_v42 }
 0x20d   :  { %892 = vmatprep.subr.bf16.mxu1 %v891_v43 }
 0x20e   :  { %894 = vmatpush3.bf16.msra.mxu1 %v891_v43 }
 0x20f   :  { %896 = vmatprep.subr.bf16.mxu1 %v895_v44 }
 0x211   :  { %804 = vmatmul.mubr.msk.f32.vlgmr.msra.gmra.mrb[2].mxu1 %vm173_vm0, %v1191_v45 }
 0x212   :  { %898 = vmatpush3.bf16.msra.mxu1 %v895_v44 }
 0x213   :  { %900 = vmatprep.subr.bf16.mxu1 %v899_v48 }
 0x216   :  { %902 = vmatpush3.bf16.msra.mxu1 %v899_v48 }
 0x217   :  { %904 = vmatprep.subr.bf16.mxu1 %v903_v51 }
 0x21a   :  { %906 = vmatpush3.bf16.msra.mxu1 %v903_v51 }
 0x21b   :  { %908 = vmatprep.subr.bf16.mxu1 %v907_v54 }
 0x21e   :  { %910 = vmatpush3.bf16.msra.mxu1 %v907_v54 }
 0x21f   :  { %912 = vmatprep.subr.bf16.mxu1 %v911_v57 }
 0x222   :  { %914 = vmatpush3.bf16.msra.mxu1 %v911_v57 }
 0x223   :  { %916 = vmatprep.subr.bf16.mxu1 %v915_v60 }
 0x226   :  { %918 = vmatpush3.bf16.msra.mxu1 %v915_v60 }
 0x227   :  { %920 = vmatprep.subr.bf16.mxu1 %v919_v0 }
 0x22a   :  { %922 = vmatpush3.bf16.msra.mxu1 %v919_v0 }
 0x22b   :  { %924 = vmatprep.subr.bf16.mxu1 %v923_v2 }
 0x22e   :  { %926 = vmatpush3.bf16.msra.mxu1 %v923_v2 }
 0x2e4   :  { %v805_v4 = vpop.f32.mrb[2].mxu1 }
 0x2e5   :  { %v356_v5 = vadd.f32 %v805_v4, %v695_v3  ;;  %v350_v6 = vpop.f32.mrb[3].mxu1 }
 0x2e6   :  { %v351_v7 = vadd.f32 %v695_v3, %v350_v6 }
 0x2e7   :  { %v699_v8 = vmul.f32 -1.442695, %v356_v5 }
 0x2e8   :  { %v698_v9 = vmul.f32 -1.442695, %v351_v7 }
 0x2e9   :  { %944 = vpow2.f32 %v699_v8 }
 0x2ea   :  { %946 = vpow2.f32 %v698_v9 }
 0x2f3   :  { %v945_v10 = vpop.eup %944 }
 0x2f4   :  { %v947_v11 = vpop.eup %946  ;;  %v366_v12 = vadd.f32 1.0, %v945_v10 }
 0x2f5   :  { %v365_v13 = vadd.f32 1.0, %v947_v11 }
 0x2f7   :  { %948 = vrcp.f32 %v365_v13 }
 0x2f8   :  { %950 = vrcp.f32 %v366_v12 }
 0x301   :  { %v949_v14 = vpop.eup %948 }
 0x302   :  { %v951_v15 = vpop.eup %950  ;;  %838 = vmatprep.mubr.f32.mxu1 %v949_v14 }
 0x303   :  { %839 = vmatmul.mubr.f32.vlgmr.msra.gmra.mrb[4].mxu1 %v951_v15 }
 0x3d6   :  { %v840_v18 = vpop.f32.mrb[4].mxu1 }
 0x3d7   :  { %v453_v19 = vpop.f32.mrb[5].mxu1 }
 0x3d8   :  { %v927_v20 = vpack.c.bf16 %v840_v18, %v453_v19 }
 0x3da   :  { %928 = vmatprep.subr.bf16.mxu0 %v927_v20 }
 0x3db   :  { %930 = vmatpush3.bf16.msra.mxu0 %v927_v20 }
 0x3de   :  { %846 = vmatmul.mubr.msk.f32.vlgmr.msra.gmra.mrb[2].mxu0 %vm173_vm0, %v1177_v33 }
 0x3df   :  { %852 = vmatprep.mubr.msk.f32.mxu0 %vm173_vm0, %v1184_v34 }
 0x4b1   :  { %v847_v23 = vpop.f32.mrb[2].mxu0 }
 0x4b2   :  { %v550_v24 = vmul.f32 %v847_v23, %v547_v22  ;;  %v530_v25 = vpop.f32.mrb[3].mxu0 }
 0x4b3   :  { %v549_v26 = vmul.f32 %v542_v21, %v530_v25 }
 0x4b5   :  { %v931_v27 = vpack.c.bf16 %v550_v24, %v549_v26 }
 0x4b7   :  { %932 = vmatprep.subr.bf16.mxu0 %v931_v27 }
 0x4b8   :  { %934 = vmatpush3.bf16.msra.mxu0 %v931_v27 }
 0x4bb   :  { %853 = vmatmul.mubr.msk.f32.vlgmr.msra.gmra.mrb[4].mxu0 %vm173_vm0, %v1191_v45 }
 0x58e   :  { %v854_v31 = vpop.f32.mrb[4].mxu0 }
 0x58f   :  { %v645_v32 = vadd.f32 %v854_v31, %v702_v30  ;;  %v639_v33 = vpop.f32.mrb[5].mxu0 }
 0x590   :  { %v640_v34 = vadd.f32 %v702_v30, %v639_v33 }
 0x591   :  { %v652_v35 = vsel %vm650_vm1, %v645_v32, -1e+30 }
 0x592   :  { %655 = vmax.xlane.f32.xlu1 %v652_v35  ;;  %v651_v36 = vsel %vm650_vm1, %v640_v34, -1e+30 }
 0x593   :  { %653 = vmax.xlane.f32.xlu0 %v651_v36 }
 0x61f   :  { %v656_v37 = vpop.xlane.xlu1 %655 }
 0x620   :  { %v654_v38 = vpop.xlane.xlu0 %653  ;;  %v658_v39 = vsub.f32 %v652_v35, %v656_v37 }
 0x621   :  { %v657_v40 = vsub.f32 %v651_v36, %v654_v38 }
 0x622   :  { %v661_v42 = vmul.f32 1.442695, %v658_v39 }
 0x623   :  { %v659_v41 = vmul.f32 1.442695, %v657_v40 }
 0x625   :  { %952 = vpow2.f32 %v659_v41 }
 0x626   :  { %954 = vpow2.f32 %v661_v42 }
 0x62f   :  { %v953_v43 = vpop.eup %952 }
 0x630   :  { %663 = vadd.xlane.f32.xlu0 %v953_v43  ;;  %v955_v44 = vpop.eup %954 }
 0x634   :  { %665 = vadd.xlane.f32.xlu0 %v955_v44 }
 0x6bd   :  { %v664_v45 = vpop.xlane.xlu0 %663 }
 0x6be   :  { %956 = vlog2.f32 %v664_v45 }
 0x6c1   :  { %v666_v46 = vpop.xlane.xlu0 %665 }
 0x6c2   :  { %958 = vlog2.f32 %v666_v46 }
 0x6c8   :  { %v957_v47 = vpop.eup %956 }
 0x6c9   :  { %v668_v48 = vmul.f32 0.6931472, %v957_v47 }
 0x6cb   :  { %v671_v49 = vsub.f32 %v657_v40, %v668_v48 }
 0x6cc   :  { %v959_v50 = vpop.eup %958 }
 0x6cd   :  { %673 = vst [vmem:[#allocation9] sm:$0xff] %v671_v49  ;;  %v670_v51 = vmul.f32 0.6931472, %v959_v50 }
 0x6cf   :  { %v672_v52 = vsub.f32 %v658_v39, %v670_v51 }
 0x6d1   :  { %674 = vst [vmem:[#allocation9 + $0x8] sm:$0xff] %v672_v52 }
 0x6d2   :  { %1037 = shalt.err (!%p1034_p0)
}
 0x6d3   :  { %s1038_s25 = scalar_lea.hbm %s1237_s9, 256 }
 0x6d4   :  { %p1039_p1 = scmp.ne.s32.totalorder %s1237_s9, %s1038_s25  ;;  %p1042_p2 = scmp.lt.u32.totalorder %s1038_s25, %s1237_s9 }
 0x6d6   :  { %p1044_p3 = pnand %p1042_p2, %p1039_p1 }
 0x6d8   :  { %1047 = shalt.err (!%p1044_p3)
}
 0x6d9   :  { %686 = dma.vmem_to_hbm [thread:$0]  %s681_s19, 256, %s1237_s9, [#allocation5], %s1056_s21, %s1056_s21, %s1057_s22  }
 0x6da   :  { %1052 = dma.done.wait [#allocation5], 256  }
 0x6db   :  { %1053 = vsyncadd [#allocation5], 4294967040 }
 0x6dc   :  { %690 = vsyncpa [#allocation4], 1 }
 0x6dd   :  { %691 = vsyncpa [#allocation7], 1 }
 0x6de   :  { %692 = vsyncpa [#allocation5], 1 }

</bundles_post_ra>
